<compile_context>
chip_gen: v6e
topology: v6e:2x2x1
jax: 0.10.0
libtpu: 0.0.40
codegen_flags: <defaults>
</compile_context>

<pallas_src>
import functools

import jax
import jax.numpy as jnp
from jax.experimental import pallas as pl
from jax.experimental.pallas import tpu as pltpu

_DIMS = (64, 32, 32, 24, 24)       # true hidden widths of the 6-layer MLP
_PAD_DIMS = (64, 32, 32, 32, 32)   # hidden widths padded to bf16-pack-friendly sizes


def mlp_kernel(x_ref,
               w1, b1, w2, b2, w3, b3, w4, b4, w5, b5, w6, b6,
               o_ref):
    """Fused 6-layer MLP for one batch tile: 5x (Linear + ReLU) + final Linear.

    Weights and inter-layer activations are bf16 (MXU-native operands); the
    MXU accumulates in f32 and the bias add / ReLU run in f32 before the
    single cast back to bf16 for the next layer. Final output is stored f32.
    """

    def layer(h_bf16, w_ref, b_ref):
        # bf16 x bf16 operands on the MXU, f32 accumulation; bias stays f32.
        return jnp.dot(h_bf16, w_ref[...],
                       preferred_element_type=jnp.float32) + b_ref[...]

    h = x_ref[...].astype(jnp.bfloat16)                     # (TB, in_dim)
    h = jnp.maximum(layer(h, w1, b1), 0.0).astype(jnp.bfloat16)
    h = jnp.maximum(layer(h, w2, b2), 0.0).astype(jnp.bfloat16)
    h = jnp.maximum(layer(h, w3, b3), 0.0).astype(jnp.bfloat16)
    h = jnp.maximum(layer(h, w4, b4), 0.0).astype(jnp.bfloat16)
    h = jnp.maximum(layer(h, w5, b5), 0.0).astype(jnp.bfloat16)
    o_ref[...] = layer(h, w6, b6)                           # (TB, out_dim) f32


def _prepare_params(params, in_dim, out_dim):
    """bf16 weights / f32 biases, with 24-wide hidden layers zero-padded to 32.

    Zero-padding the hidden widths is numerically exact: padded weight columns
    and bias entries are zero, ReLU keeps those activations at exactly zero,
    and the padded rows of the following weight contribute exactly nothing.
    """
    pdims = [in_dim, *_PAD_DIMS, out_dim]
    kparams = []
    for li in range(6):
        w = params[2 * li].astype(jnp.bfloat16)       # (in, out)
        b = params[2 * li + 1].astype(jnp.float32)    # (1, out)
        pin, pout = pdims[li], pdims[li + 1]
        w = jnp.pad(w, ((0, pin - w.shape[0]), (0, pout - w.shape[1])))
        b = jnp.pad(b, ((0, 0), (0, pout - b.shape[1])))
        kparams.extend([w, b])
    return kparams


def _vmem_limit_bytes():
    """Half the chip's physical VMEM (generation-dependent), 32 MiB fallback."""
    try:
        cap = int(pltpu.get_tpu_info().vmem_capacity_bytes)
        return max(32 * 1024 * 1024, min(cap // 2, 64 * 1024 * 1024))
    except Exception:
        return 32 * 1024 * 1024


@functools.partial(jax.jit, static_argnames=("tb",))
def feedforward_nn(x, params, *, tb=4096):
    """x: (B, in_dim) float32 (or bf16). params: flat list [w1,b1,...,w6,b6] (f32)."""
    batch, in_dim = x.shape
    out_dim = params[-2].shape[1]

    kparams = _prepare_params(params, in_dim, out_dim)

    # --- batch tiling: big tiles to amortize the ~0.35us/step overhead; for
    # moderately large single-tile batches split into 2 tiles so both of
    # v7x's TensorCores get work (dimension_semantics=("parallel",)).
    if batch <= tb:
        if batch >= 2048:
            tile_b = (((batch + 1) // 2) + 7) // 8 * 8   # half-batch, 8-aligned
        else:
            tile_b = batch                               # full-extent -> always legal
    else:
        tile_b = tb
    grid = (pl.cdiv(batch, tile_b),)

    x_spec = pl.BlockSpec((tile_b, in_dim), lambda i: (i, 0))
    # Constant index_map -> each weight/bias is DMA'd once and stays resident.
    param_specs = [pl.BlockSpec(p.shape, lambda i: (0, 0)) for p in kparams]
    # Lane width == full array last dim (out_dim) -> legal block shape; no padding.
    out_spec = pl.BlockSpec((tile_b, out_dim), lambda i: (i, 0))

    # --- advisory cost estimate (matches the real, de-padded traffic).
    pdims = (in_dim,) + _PAD_DIMS + (out_dim,)
    macs = sum(pdims[i] * pdims[i + 1] for i in range(len(pdims) - 1))
    weight_bytes = sum(int(p.size) * p.dtype.itemsize for p in kparams)
    cost = pl.CostEstimate(
        flops=2 * batch * macs,
        transcendentals=0,
        bytes_accessed=batch * in_dim * x.dtype.itemsize
        + batch * out_dim * 4
        + weight_bytes,
    )

    out = pl.pallas_call(
        mlp_kernel,
        out_shape=jax.ShapeDtypeStruct((batch, out_dim), jnp.float32),
        grid=grid,
        in_specs=[x_spec] + param_specs,
        out_specs=out_spec,
        compiler_params=pltpu.CompilerParams(
            dimension_semantics=("parallel",),      # shards batch across TCs on v7x
            vmem_limit_bytes=_vmem_limit_bytes(),   # generation-dependent ceiling
        ),
        cost_estimate=cost,
    )(x, *kparams)

    return out


def init_params(key, in_dim, out_dim):
    """Deterministic PyTorch-style (uniform +/- 1/sqrt(fan_in)) init, f32."""
    dims = [in_dim, *_DIMS, out_dim]
    params = []
    for i in range(len(dims) - 1):
        fan_in, fan_out = dims[i], dims[i + 1]
        key, kw, kb = jax.random.split(key, 3)
        bound = 1.0 / jnp.sqrt(jnp.float32(fan_in))
        # weight stored as (in_features, out_features) for x @ W
        w = jax.random.uniform(kw, (fan_in, fan_out), jnp.float32, -bound, bound)
        b = jax.random.uniform(kb, (1, fan_out), jnp.float32, -bound, bound)
        params.extend([w, b])
    return params


def reference_mlp_bf16(x, params):
    """Pure-JAX reference with the same bf16-operand / f32-accum numerics."""
    h = x
    for i in range(0, len(params) - 2, 2):
        w = params[i].astype(jnp.bfloat16)
        h = jnp.maximum(
            jnp.dot(h.astype(jnp.bfloat16), w, preferred_element_type=jnp.float32)
            + params[i + 1], 0.0)
    w = params[-2].astype(jnp.bfloat16)
    return (jnp.dot(h.astype(jnp.bfloat16), w, preferred_element_type=jnp.float32)
            + params[-1])


def reference_mlp_f32(x, params):
    """Full-precision reference (sanity check against the PyTorch semantics)."""
    h = x
    for i in range(0, len(params) - 2, 2):
        h = jnp.maximum(h @ params[i] + params[i + 1], 0.0)
    return h @ params[-2] + params[-1]


if __name__ == "__main__":
    key = jax.random.PRNGKey(0)
    in_dim, out_dim, batch = 16, 4, 8

    key, kx = jax.random.split(key)
    x = jax.random.normal(kx, (batch, in_dim), jnp.float32)
    params = init_params(key, in_dim, out_dim)

    out = feedforward_nn(x, params)
    out = jax.block_until_ready(out)

    assert out.shape == (batch, out_dim)
    # Tight check against a bf16-operand / f32-accum reference (same numerics).
    ref_bf16 = reference_mlp_bf16(x, params)
    assert jnp.allclose(out, ref_bf16, atol=1e-3, rtol=1e-3)
    # Loose check against the full-f32 PyTorch-equivalent forward.
    # NOTE: bf16 matmul operands intentionally diverge from f32-exact parity.
    ref_f32 = reference_mlp_f32(x, params)
    assert jnp.allclose(out, ref_f32, atol=5e-2, rtol=5e-2)

    print("KERNEL_OK")
</pallas_src>

<mosaic_0001>
module attributes {stable_mosaic.version = 11 : i64} {
  func.func @mlp_kernel(%arg0: i32, %arg1: memref<8x16xf32, #tpu.memory_space<vmem>>, %arg2: memref<16x64xbf16, #tpu.memory_space<vmem>>, %arg3: memref<1x64xf32, #tpu.memory_space<vmem>>, %arg4: memref<64x32xbf16, #tpu.memory_space<vmem>>, %arg5: memref<1x32xf32, #tpu.memory_space<vmem>>, %arg6: memref<32x32xbf16, #tpu.memory_space<vmem>>, %arg7: memref<1x32xf32, #tpu.memory_space<vmem>>, %arg8: memref<32x32xbf16, #tpu.memory_space<vmem>>, %arg9: memref<1x32xf32, #tpu.memory_space<vmem>>, %arg10: memref<32x32xbf16, #tpu.memory_space<vmem>>, %arg11: memref<1x32xf32, #tpu.memory_space<vmem>>, %arg12: memref<32x4xbf16, #tpu.memory_space<vmem>>, %arg13: memref<1x4xf32, #tpu.memory_space<vmem>>, %arg14: memref<8x4xf32, #tpu.memory_space<vmem>>) attributes {dimension_semantics = [#tpu.dimension_semantics<parallel>], iteration_bounds = array<i64: 1>, scalar_prefetch = 0 : i64, scratch_operands = 0 : i64, tpu.core_type = #tpu.core_type<tc>, window_params = [{transform_indices = @transform_0, window_bounds = array<i64: 8, 16>}, {pipeline_mode = #tpu.pipeline_mode<synchronous>, transform_indices = @transform_1, window_bounds = array<i64: 16, 64>}, {pipeline_mode = #tpu.pipeline_mode<synchronous>, transform_indices = @transform_2, window_bounds = array<i64: 1, 64>}, {pipeline_mode = #tpu.pipeline_mode<synchronous>, transform_indices = @transform_3, window_bounds = array<i64: 64, 32>}, {pipeline_mode = #tpu.pipeline_mode<synchronous>, transform_indices = @transform_4, window_bounds = array<i64: 1, 32>}, {pipeline_mode = #tpu.pipeline_mode<synchronous>, transform_indices = @transform_5, window_bounds = array<i64: 32, 32>}, {pipeline_mode = #tpu.pipeline_mode<synchronous>, transform_indices = @transform_6, window_bounds = array<i64: 1, 32>}, {pipeline_mode = #tpu.pipeline_mode<synchronous>, transform_indices = @transform_7, window_bounds = array<i64: 32, 32>}, {pipeline_mode = #tpu.pipeline_mode<synchronous>, transform_indices = @transform_8, window_bounds = array<i64: 1, 32>}, {pipeline_mode = #tpu.pipeline_mode<synchronous>, transform_indices = @transform_9, window_bounds = array<i64: 32, 32>}, {pipeline_mode = #tpu.pipeline_mode<synchronous>, transform_indices = @transform_10, window_bounds = array<i64: 1, 32>}, {pipeline_mode = #tpu.pipeline_mode<synchronous>, transform_indices = @transform_11, window_bounds = array<i64: 32, 4>}, {pipeline_mode = #tpu.pipeline_mode<synchronous>, transform_indices = @transform_12, window_bounds = array<i64: 1, 4>}, {transform_indices = @transform_13, window_bounds = array<i64: 8, 4>}]} {
    %c0 = arith.constant 0 : index
    %c0_0 = arith.constant 0 : index
    %0 = vector.load %arg1[%c0, %c0_0] : memref<8x16xf32, #tpu.memory_space<vmem>>, vector<8x16xf32>
    %1 = arith.truncf %0 : vector<8x16xf32> to vector<8x16xbf16>
    %c0_1 = arith.constant 0 : index
    %c0_2 = arith.constant 0 : index
    %2 = vector.load %arg2[%c0_1, %c0_2] : memref<16x64xbf16, #tpu.memory_space<vmem>>, vector<16x64xbf16>
    %cst = arith.constant dense<0.000000e+00> : vector<8x64xf32>
    %3 = tpu.matmul %1, %2, %cst {dimension_numbers = #tpu.dot_dimension_numbers<[1], [0], [0], [1], [0, 0, 1, 1], [], []>} : vector<8x16xbf16>, vector<16x64xbf16>, vector<8x64xf32> -> vector<8x64xf32>
    %c0_3 = arith.constant 0 : index
    %c0_4 = arith.constant 0 : index
    %4 = vector.load %arg3[%c0_3, %c0_4] : memref<1x64xf32, #tpu.memory_space<vmem>>, vector<1x64xf32>
    %5 = vector.broadcast %4 : vector<1x64xf32> to vector<8x64xf32>
    %6 = arith.addf %3, %5 : vector<8x64xf32>
    %cst_5 = arith.constant 0.000000e+00 : f32
    %7 = vector.broadcast %cst_5 : f32 to vector<8x64xf32>
    %8 = arith.maximumf %6, %7 : vector<8x64xf32>
    %9 = arith.truncf %8 : vector<8x64xf32> to vector<8x64xbf16>
    %c0_6 = arith.constant 0 : index
    %c0_7 = arith.constant 0 : index
    %10 = vector.load %arg4[%c0_6, %c0_7] : memref<64x32xbf16, #tpu.memory_space<vmem>>, vector<64x32xbf16>
    %cst_8 = arith.constant dense<0.000000e+00> : vector<8x32xf32>
    %11 = tpu.matmul %9, %10, %cst_8 {dimension_numbers = #tpu.dot_dimension_numbers<[1], [0], [0], [1], [0, 0, 1, 1], [], []>} : vector<8x64xbf16>, vector<64x32xbf16>, vector<8x32xf32> -> vector<8x32xf32>
    %c0_9 = arith.constant 0 : index
    %c0_10 = arith.constant 0 : index
    %12 = vector.load %arg5[%c0_9, %c0_10] : memref<1x32xf32, #tpu.memory_space<vmem>>, vector<1x32xf32>
    %13 = vector.broadcast %12 : vector<1x32xf32> to vector<8x32xf32>
    %14 = arith.addf %11, %13 : vector<8x32xf32>
    %cst_11 = arith.constant 0.000000e+00 : f32
    %15 = vector.broadcast %cst_11 : f32 to vector<8x32xf32>
    %16 = arith.maximumf %14, %15 : vector<8x32xf32>
    %17 = arith.truncf %16 : vector<8x32xf32> to vector<8x32xbf16>
    %c0_12 = arith.constant 0 : index
    %c0_13 = arith.constant 0 : index
    %18 = vector.load %arg6[%c0_12, %c0_13] : memref<32x32xbf16, #tpu.memory_space<vmem>>, vector<32x32xbf16>
    %cst_14 = arith.constant dense<0.000000e+00> : vector<8x32xf32>
    %19 = tpu.matmul %17, %18, %cst_14 {dimension_numbers = #tpu.dot_dimension_numbers<[1], [0], [0], [1], [0, 0, 1, 1], [], []>} : vector<8x32xbf16>, vector<32x32xbf16>, vector<8x32xf32> -> vector<8x32xf32>
    %c0_15 = arith.constant 0 : index
    %c0_16 = arith.constant 0 : index
    %20 = vector.load %arg7[%c0_15, %c0_16] : memref<1x32xf32, #tpu.memory_space<vmem>>, vector<1x32xf32>
    %21 = vector.broadcast %20 : vector<1x32xf32> to vector<8x32xf32>
    %22 = arith.addf %19, %21 : vector<8x32xf32>
    %cst_17 = arith.constant 0.000000e+00 : f32
    %23 = vector.broadcast %cst_17 : f32 to vector<8x32xf32>
    %24 = arith.maximumf %22, %23 : vector<8x32xf32>
    %25 = arith.truncf %24 : vector<8x32xf32> to vector<8x32xbf16>
    %c0_18 = arith.constant 0 : index
    %c0_19 = arith.constant 0 : index
    %26 = vector.load %arg8[%c0_18, %c0_19] : memref<32x32xbf16, #tpu.memory_space<vmem>>, vector<32x32xbf16>
    %cst_20 = arith.constant dense<0.000000e+00> : vector<8x32xf32>
    %27 = tpu.matmul %25, %26, %cst_20 {dimension_numbers = #tpu.dot_dimension_numbers<[1], [0], [0], [1], [0, 0, 1, 1], [], []>} : vector<8x32xbf16>, vector<32x32xbf16>, vector<8x32xf32> -> vector<8x32xf32>
    %c0_21 = arith.constant 0 : index
    %c0_22 = arith.constant 0 : index
    %28 = vector.load %arg9[%c0_21, %c0_22] : memref<1x32xf32, #tpu.memory_space<vmem>>, vector<1x32xf32>
    %29 = vector.broadcast %28 : vector<1x32xf32> to vector<8x32xf32>
    %30 = arith.addf %27, %29 : vector<8x32xf32>
    %cst_23 = arith.constant 0.000000e+00 : f32
    %31 = vector.broadcast %cst_23 : f32 to vector<8x32xf32>
    %32 = arith.maximumf %30, %31 : vector<8x32xf32>
    %33 = arith.truncf %32 : vector<8x32xf32> to vector<8x32xbf16>
    %c0_24 = arith.constant 0 : index
    %c0_25 = arith.constant 0 : index
    %34 = vector.load %arg10[%c0_24, %c0_25] : memref<32x32xbf16, #tpu.memory_space<vmem>>, vector<32x32xbf16>
    %cst_26 = arith.constant dense<0.000000e+00> : vector<8x32xf32>
    %35 = tpu.matmul %33, %34, %cst_26 {dimension_numbers = #tpu.dot_dimension_numbers<[1], [0], [0], [1], [0, 0, 1, 1], [], []>} : vector<8x32xbf16>, vector<32x32xbf16>, vector<8x32xf32> -> vector<8x32xf32>
    %c0_27 = arith.constant 0 : index
    %c0_28 = arith.constant 0 : index
    %36 = vector.load %arg11[%c0_27, %c0_28] : memref<1x32xf32, #tpu.memory_space<vmem>>, vector<1x32xf32>
    %37 = vector.broadcast %36 : vector<1x32xf32> to vector<8x32xf32>
    %38 = arith.addf %35, %37 : vector<8x32xf32>
    %cst_29 = arith.constant 0.000000e+00 : f32
    %39 = vector.broadcast %cst_29 : f32 to vector<8x32xf32>
    %40 = arith.maximumf %38, %39 : vector<8x32xf32>
    %41 = arith.truncf %40 : vector<8x32xf32> to vector<8x32xbf16>
    %c0_30 = arith.constant 0 : index
    %c0_31 = arith.constant 0 : index
    %42 = vector.load %arg12[%c0_30, %c0_31] : memref<32x4xbf16, #tpu.memory_space<vmem>>, vector<32x4xbf16>
    %cst_32 = arith.constant dense<0.000000e+00> : vector<8x4xf32>
    %43 = tpu.matmul %41, %42, %cst_32 {dimension_numbers = #tpu.dot_dimension_numbers<[1], [0], [0], [1], [0, 0, 1, 1], [], []>} : vector<8x32xbf16>, vector<32x4xbf16>, vector<8x4xf32> -> vector<8x4xf32>
    %c0_33 = arith.constant 0 : index
    %c0_34 = arith.constant 0 : index
    %44 = vector.load %arg13[%c0_33, %c0_34] : memref<1x4xf32, #tpu.memory_space<vmem>>, vector<1x4xf32>
    %45 = vector.broadcast %44 : vector<1x4xf32> to vector<8x4xf32>
    %46 = arith.addf %43, %45 : vector<8x4xf32>
    %c0_35 = arith.constant 0 : index
    %c0_36 = arith.constant 0 : index
    %47 = vector.load %arg14[%c0_35, %c0_36] : memref<8x4xf32, #tpu.memory_space<vmem>>, vector<8x4xf32>
    tpu.vector_store %arg14[%c0_35, %c0_36], %46 {strides = array<i32>} : memref<8x4xf32, #tpu.memory_space<vmem>>, vector<8x4xf32>,
    return
  }
  func.func @transform_0(%arg0: i32) -> (i32, i32) {
    %c0_i32 = arith.constant 0 : i32
    %c0_i32_0 = arith.constant 0 : i32
    return %arg0, %c0_i32 : i32, i32
  }
  func.func @transform_1(%arg0: i32) -> (i32, i32) {
    %c0_i32 = arith.constant 0 : i32
    %c0_i32_0 = arith.constant 0 : i32
    %c0_i32_1 = arith.constant 0 : i32
    return %c0_i32, %c0_i32_0 : i32, i32
  }
  func.func @transform_2(%arg0: i32) -> (i32, i32) {
    %c0_i32 = arith.constant 0 : i32
    %c0_i32_0 = arith.constant 0 : i32
    %c0_i32_1 = arith.constant 0 : i32
    return %c0_i32, %c0_i32_0 : i32, i32
  }
  func.func @transform_3(%arg0: i32) -> (i32, i32) {
    %c0_i32 = arith.constant 0 : i32
    %c0_i32_0 = arith.constant 0 : i32
    %c0_i32_1 = arith.constant 0 : i32
    return %c0_i32, %c0_i32_0 : i32, i32
  }
  func.func @transform_4(%arg0: i32) -> (i32, i32) {
    %c0_i32 = arith.constant 0 : i32
    %c0_i32_0 = arith.constant 0 : i32
    %c0_i32_1 = arith.constant 0 : i32
    return %c0_i32, %c0_i32_0 : i32, i32
  }
  func.func @transform_5(%arg0: i32) -> (i32, i32) {
    %c0_i32 = arith.constant 0 : i32
    %c0_i32_0 = arith.constant 0 : i32
    %c0_i32_1 = arith.constant 0 : i32
    return %c0_i32, %c0_i32_0 : i32, i32
  }
  func.func @transform_6(%arg0: i32) -> (i32, i32) {
    %c0_i32 = arith.constant 0 : i32
    %c0_i32_0 = arith.constant 0 : i32
    %c0_i32_1 = arith.constant 0 : i32
    return %c0_i32, %c0_i32_0 : i32, i32
  }
  func.func @transform_7(%arg0: i32) -> (i32, i32) {
    %c0_i32 = arith.constant 0 : i32
    %c0_i32_0 = arith.constant 0 : i32
    %c0_i32_1 = arith.constant 0 : i32
    return %c0_i32, %c0_i32_0 : i32, i32
  }
  func.func @transform_8(%arg0: i32) -> (i32, i32) {
    %c0_i32 = arith.constant 0 : i32
    %c0_i32_0 = arith.constant 0 : i32
    %c0_i32_1 = arith.constant 0 : i32
    return %c0_i32, %c0_i32_0 : i32, i32
  }
  func.func @transform_9(%arg0: i32) -> (i32, i32) {
    %c0_i32 = arith.constant 0 : i32
    %c0_i32_0 = arith.constant 0 : i32
    %c0_i32_1 = arith.constant 0 : i32
    return %c0_i32, %c0_i32_0 : i32, i32
  }
  func.func @transform_10(%arg0: i32) -> (i32, i32) {
    %c0_i32 = arith.constant 0 : i32
    %c0_i32_0 = arith.constant 0 : i32
    %c0_i32_1 = arith.constant 0 : i32
    return %c0_i32, %c0_i32_0 : i32, i32
  }
  func.func @transform_11(%arg0: i32) -> (i32, i32) {
    %c0_i32 = arith.constant 0 : i32
    %c0_i32_0 = arith.constant 0 : i32
    %c0_i32_1 = arith.constant 0 : i32
    return %c0_i32, %c0_i32_0 : i32, i32
  }
  func.func @transform_12(%arg0: i32) -> (i32, i32) {
    %c0_i32 = arith.constant 0 : i32
    %c0_i32_0 = arith.constant 0 : i32
    %c0_i32_1 = arith.constant 0 : i32
    return %c0_i32, %c0_i32_0 : i32, i32
  }
  func.func @transform_13(%arg0: i32) -> (i32, i32) {
    %c0_i32 = arith.constant 0 : i32
    %c0_i32_0 = arith.constant 0 : i32
    return %arg0, %c0_i32 : i32, i32
  }
}

</mosaic_0001>

<bundles_post_ra>
// kernel: feedforward_nn.1
= control target key start
LH: loop header
LB: loop body
LE: loop exit
PB: predicated region body
PF: predicated region fallthrough
CT: control target
= control target key end

     0   :  { %v579_v0 = vmov 0.0   ;;  %vm580_vm0 = vmmov 0   ;;  %vm62_vm1 = vcmask 130048   ;;  %vm147_vm2 = vcmask 523264   ;;  %s743_s1 = inlined_call_operand.vmem [shape: bf16[16,64], index: 1, kind: input, shape index: {}]   ;;  %s744_s0 = inlined_call_operand.vmem [shape: f32[8,16], index: 0, kind: input, shape index: {}]   ;;  %s745_s3 = inlined_call_operand.vmem [shape: bf16[64,32], index: 3, kind: input, shape index: {}]   ;;  %s746_s5 = inlined_call_operand.vmem [shape: bf16[32,32], index: 5, kind: input, shape index: {}]   ;;  %s747_s2 = inlined_call_operand.vmem [shape: f32[1,64], index: 2, kind: input, shape index: {}]   ;;  %s748_s7 = inlined_call_operand.vmem [shape: bf16[32,32], index: 7, kind: input, shape index: {}]   ;;  %s749_s4 = inlined_call_operand.vmem [shape: f32[1,32], index: 4, kind: input, shape index: {}]   ;;  %s750_s9 = inlined_call_operand.vmem [shape: bf16[32,32], index: 9, kind: input, shape index: {}]   ;;  %s751_s6 = inlined_call_operand.vmem [shape: f32[1,32], index: 6, kind: input, shape index: {}]   ;;  %s752_s11 = inlined_call_operand.vmem [shape: bf16[32,4], index: 11, kind: input, shape index: {}]   ;;  %s753_s8 = inlined_call_operand.vmem [shape: f32[1,32], index: 8, kind: input, shape index: {}]   ;;  %s754_s10 = inlined_call_operand.vmem [shape: f32[1,32], index: 10, kind: input, shape index: {}]   ;;  %s755_s12 = inlined_call_operand.vmem [shape: f32[1,4], index: 12, kind: input, shape index: {}]   ;;  %s756_s13 = inlined_call_operand.vmem [shape: f32[8,4], index: 13, kind: output, shape index: {}]  }
   0x1   :  { %514 = vmatprep.subr.bf16.mxu0 %v579_v0  ;;  %v566_v1 = vld [vmem:[%s743_s1] sm:$0xff]   ;;  %516 = vmatprep.mubr.msk.bf16.mxu0 %vm580_vm0, %v579_v0  ;;  %v567_v4 = vld [vmem:[%s745_s3 + $0x18] sm:$0xff]   ;;  %v568_v5 = vld [vmem:[%s745_s3 + $0x10] sm:$0xff]   ;;  %vm216_vm3 = vcmask 261120   ;;  %vm464_vm4 = vcmask 31744  }
   0x2   :  { %v45_v2 = vld [vmem:[%s744_s0] sm:$0xff]  ;;  %520 = vmatprep.subr.bf16.mxu1 %v579_v0  ;;  %528 = vmatprep.mubr.msk.bf16.mxu1 %vm580_vm0, %v579_v0  ;;  %v569_v6 = vld [vmem:[%s745_s3 + $0x8] sm:$0xff]  }
   0x3   :  { %515 = vmatpush3.bf16.msra.mxu0 %v566_v1  ;;  %v46_v3 = vpack.c.bf16 %v45_v2, %v45_v2  ;;  %521 = vmatpush3.bf16.msra.mxu1 %v567_v4  ;;  %v570_v7 = vld [vmem:[%s745_s3] sm:$0xff]   ;;  %v571_v8 = vld [vmem:[%s746_s5 + $0x8] sm:$0xff]  }
   0x4   :  { %532 = vmatprep.subr.bf16.mxu0 %v579_v0  ;;  %522 = vmatprep.subr.bf16.mxu1 %v579_v0  ;;  %v470_v9 = vld [vmem:[%s747_s2] ss:$0 sm:$0xff]  ;;  %v573_v24 = vld [vmem:[%s748_s7 + $0x8] sm:$0xff]  }
   0x5   :  { %v572_v17 = vld [vmem:[%s746_s5] sm:$0xff]   ;;  %v575_v28 = vld [vmem:[%s750_s9 + $0x8] sm:$0xff]  }
   0x6   :  { %517 = vmatmul.mubr.msk.bf16.vlgmr.msra.gmra.mxu0 %vm62_vm1, %v46_v3  ;;  %v473_v18 = vld [vmem:[%s749_s4] ss:$0 sm:$0xff]  ;;  %v577_v38 = vld [vmem:[%s752_s11 + $0x8] sm:$0xff]  }
   0x7   :  { %536 = vmatprep.mubr.msk.bf16.mxu0 %vm580_vm0, %v579_v0  ;;  %523 = vmatpush3.bf16.msra.mxu1 %v568_v5  ;;  %v574_v27 = vld [vmem:[%s748_s7] sm:$0xff]  }
   0x8   :  { %524 = vmatprep.subr.bf16.mxu1 %v579_v0  ;;  %533 = vmatpush3.bf16.msra.mxu0 %v571_v8  ;;  %v479_v29 = vld [vmem:[%s751_s6] ss:$0 sm:$0xff] }
   0x9   :  { %534 = vmatprep.subr.bf16.mxu0 %v579_v0  ;;  %v576_v37 = vld [vmem:[%s750_s9] sm:$0xff]  }
   0xa   :  { %v483_v39 = vld [vmem:[%s753_s8] ss:$0 sm:$0xff] }
   0xb   :  { %525 = vmatpush3.bf16.msra.mxu1 %v569_v6  ;;  %v578_v47 = vld [vmem:[%s752_s11] sm:$0xff]  }
   0xc   :  { %526 = vmatprep.subr.bf16.mxu1 %v579_v0  ;;  %535 = vmatpush3.bf16.msra.mxu0 %v572_v17  ;;  %v487_v48 = vld [vmem:[%s754_s10] ss:$0 sm:$0xff] }
   0xd   :  { %540 = vmatprep.subr.bf16.mxu0 %v579_v0  ;;  %v491_v56 = vld [vmem:[%s755_s12] ss:$0 sm:$0xff] }
   0xf   :  { %527 = vmatpush3.bf16.msra.mxu1 %v570_v7 }
  0x10   :  { %548 = vmatprep.subr.bf16.mxu1 %v579_v0 }
  0xc6   :  { %v100_v10 = vpop.f32.mrf.mxu0 }
  0xc7   :  { %v101_v11 = vadd.f32 %v470_v9, %v100_v10 }
  0xc8   :  { %v518_v12 = vpop.f32.mrf.mxu0 }
  0xc9   :  { %v106_v13 = vmax.f32 %v101_v11, 0.0 }
  0xca   :  { %v103_v14 = vpop.f32.mrf.mxu0 }
  0xcb   :  { %v107_v15 = vpack.c.bf16 %v106_v13, %v106_v13 }
  0xcc   :  { %v519_v16 = vpop.f32.mrf.mxu0 }
  0xcd   :  { %529 = vmatmul.mubr.msk.bf16.vlgmr.msra.gmra.mxu1 %vm147_vm2, %v107_v15 }
  0xce   :  { %552 = vmatprep.mubr.msk.bf16.mxu1 %vm580_vm0, %v579_v0  ;;  %549 = vmatpush3.bf16.msra.mxu1 %v575_v28 }
  0xcf   :  { %550 = vmatprep.subr.bf16.mxu1 %v579_v0 }
  0xd2   :  { %551 = vmatpush3.bf16.msra.mxu1 %v576_v37 }
 0x18d   :  { %v185_v19 = vpop.f32.mrf.mxu1 }
 0x18e   :  { %v186_v20 = vadd.f32 %v473_v18, %v185_v19 }
 0x18f   :  { %v530_v21 = vpop.f32.mrf.mxu1 }
 0x190   :  { %v191_v22 = vmax.f32 %v186_v20, 0.0 }
 0x191   :  { %v188_v23 = vpop.f32.mrf.mxu1 }
 0x192   :  { %v192_v25 = vpack.c.bf16 %v191_v22, %v191_v22 }
 0x193   :  { %v531_v26 = vpop.f32.mrf.mxu1 }
 0x194   :  { %537 = vmatmul.mubr.msk.bf16.vlgmr.msra.gmra.mxu0 %vm216_vm3, %v192_v25 }
 0x195   :  { %541 = vmatpush3.bf16.msra.mxu0 %v573_v24  ;;  %544 = vmatprep.mubr.msk.bf16.mxu0 %vm580_vm0, %v579_v0 }
 0x196   :  { %542 = vmatprep.subr.bf16.mxu0 %v579_v0 }
 0x199   :  { %543 = vmatpush3.bf16.msra.mxu0 %v574_v27 }
 0x19a   :  { %556 = vmatprep.subr.bf16.mxu0 %v579_v0 }
 0x254   :  { %v254_v30 = vpop.f32.mrf.mxu0 }
 0x255   :  { %v255_v31 = vadd.f32 %v479_v29, %v254_v30 }
 0x256   :  { %v538_v32 = vpop.f32.mrf.mxu0 }
 0x257   :  { %v260_v33 = vmax.f32 %v255_v31, 0.0 }
 0x258   :  { %v257_v34 = vpop.f32.mrf.mxu0 }
 0x259   :  { %v261_v35 = vpack.c.bf16 %v260_v33, %v260_v33 }
 0x25a   :  { %v539_v36 = vpop.f32.mrf.mxu0 }
 0x25b   :  { %545 = vmatmul.mubr.msk.bf16.vlgmr.msra.gmra.mxu0 %vm216_vm3, %v261_v35 }
 0x25c   :  { %560 = vmatprep.mubr.msk.bf16.mxu0 %vm580_vm0, %v579_v0  ;;  %557 = vmatpush3.bf16.msra.mxu0 %v577_v38 }
 0x25d   :  { %558 = vmatprep.subr.bf16.mxu0 %v579_v0 }
 0x260   :  { %559 = vmatpush3.bf16.msra.mxu0 %v578_v47 }
 0x31b   :  { %v322_v40 = vpop.f32.mrf.mxu0 }
 0x31c   :  { %v323_v41 = vadd.f32 %v483_v39, %v322_v40 }
 0x31d   :  { %v546_v42 = vpop.f32.mrf.mxu0 }
 0x31e   :  { %v328_v43 = vmax.f32 %v323_v41, 0.0 }
 0x31f   :  { %v325_v44 = vpop.f32.mrf.mxu0 }
 0x320   :  { %v329_v45 = vpack.c.bf16 %v328_v43, %v328_v43 }
 0x321   :  { %v547_v46 = vpop.f32.mrf.mxu0 }
 0x322   :  { %553 = vmatmul.mubr.msk.bf16.vlgmr.msra.gmra.mxu1 %vm216_vm3, %v329_v45 }
 0x3e2   :  { %v390_v49 = vpop.f32.mrf.mxu1 }
 0x3e3   :  { %v391_v50 = vadd.f32 %v487_v48, %v390_v49 }
 0x3e4   :  { %v554_v51 = vpop.f32.mrf.mxu1 }
 0x3e5   :  { %v396_v52 = vmax.f32 %v391_v50, 0.0 }
 0x3e6   :  { %v393_v53 = vpop.f32.mrf.mxu1 }
 0x3e7   :  { %v397_v54 = vpack.c.bf16 %v396_v52, %v396_v52 }
 0x3e8   :  { %v555_v55 = vpop.f32.mrf.mxu1 }
 0x3e9   :  { %561 = vmatmul.mubr.msk.bf16.vlgmr.msra.gmra.mxu0 %vm216_vm3, %v397_v54 }
 0x4a9   :  { %v458_v57 = vpop.f32.mrf.mxu0 }
 0x4aa   :  { %v459_v58 = vadd.f32 %v491_v56, %v458_v57 }
 0x4ab   :  { %v562_v59 = vpop.f32.mrf.mxu0 }
 0x4ac   :  { %465 = vst.msk [vmem:[%s756_s13] sm:$0xff] %vm464_vm4, %v459_v58 }
 0x4ad   :  { %v461_v60 = vpop.f32.mrf.mxu0 }
 0x4af   :  { %v563_v61 = vpop.f32.mrf.mxu0 }

</bundles_post_ra>
